<compile_context>
chip_gen: v7x
topology: tpu7x:2x2x1
jax: 0.10.0
libtpu: 0.0.40
codegen_flags: <defaults>
</compile_context>

<pallas_src>
import jax
import jax.numpy as jnp
from jax.experimental import pallas as pl
from jax.experimental.pallas import tpu as pltpu


def dqn_kernel(x_ref, w1_ref, b1_ref, w2_ref, b2_ref, w3_ref, b3_ref, o_ref):
    x = x_ref[...]                                  # (TB, 8)   f32
    w1 = w1_ref[...]                                # (8, 128)  f32
    tb = x.shape[0]
    h_dim = w1.shape[1]

    # ---- layer1 + ReLU: K=8 contraction as 8 VPU broadcast-FMAs (skip MXU) ----
    h1 = jnp.broadcast_to(b1_ref[...], (tb, h_dim))          # (TB, 128) f32
    for k in range(w1.shape[0]):                              # static, 8 iters
        h1 = h1 + x[:, k:k + 1] * w1[k:k + 1, :]
    h1 = jnp.maximum(h1, 0.0)

    # ---- layer2 + ReLU: MXU matmul, bf16 inputs / f32 accumulate ----
    h2 = jnp.dot(h1.astype(jnp.bfloat16), w2_ref[...],
                 preferred_element_type=jnp.float32)
    h2 = jnp.maximum(h2 + b2_ref[...], 0.0)                   # (TB, 128) f32

    # ---- layer3 (no activation): output padded to 128 lanes for dense stores ----
    out = jnp.dot(h2.astype(jnp.bfloat16), w3_ref[...],
                  preferred_element_type=jnp.float32)
    out = out + b3_ref[...]                                    # (TB, 128) f32
    o_ref[...] = out.astype(o_ref.dtype)


def dqn_forward(x, params, *, block_b=1024):
    """x: (B, 8) f32; params: dict of (in,out) weights and (1,out) biases."""
    w1 = params["w1"].astype(jnp.float32)
    b1 = params["b1"].astype(jnp.float32)
    w2 = params["w2"].astype(jnp.bfloat16)          # MXU inputs in bf16
    b2 = params["b2"].astype(jnp.float32)
    w3 = params["w3"]
    b3 = params["b3"]

    B, f_in = x.shape
    h_dim = w1.shape[1]                              # 128
    out_dim = w3.shape[1]                            # 4
    n_pad = 128                                      # lane-dense output width

    # Zero-pad layer-3 to 128 output columns (lane-dense writeback).
    w3p = jnp.zeros((w3.shape[0], n_pad), jnp.bfloat16).at[:, :out_dim].set(
        w3.astype(jnp.bfloat16))
    b3p = jnp.zeros((1, n_pad), jnp.float32).at[:, :out_dim].set(
        b3.astype(jnp.float32))

    def round_up(a, m):
        return (a + m - 1) // m * m

    # Batch tile: multiple of 8 sublanes, capped at block_b; pad batch to fit.
    tb = min(block_b, round_up(B, 8))
    b_pad = round_up(B, tb)
    if b_pad != B:
        x = jnp.pad(x, ((0, b_pad - B), (0, 0)))

    grid = (b_pad // tb,)

    flops = 2 * b_pad * (f_in * h_dim + h_dim * h_dim + h_dim * n_pad)
    bytes_accessed = (b_pad * f_in * 4 + w1.size * 4 + b1.size * 4
                      + w2.size * 2 + b2.size * 4 + w3p.size * 2
                      + b3p.size * 4 + b_pad * n_pad * 4)

    full = lambda a: pl.BlockSpec(a.shape, lambda i: (0,) * a.ndim)

    out_padded = pl.pallas_call(
        dqn_kernel,
        out_shape=jax.ShapeDtypeStruct((b_pad, n_pad), jnp.float32),
        grid=grid,
        in_specs=[
            pl.BlockSpec((tb, f_in), lambda i: (i, 0)),   # x: batch-tiled
            full(w1), full(b1), full(w2), full(b2), full(w3p), full(b3p),
        ],
        out_specs=pl.BlockSpec((tb, n_pad), lambda i: (i, 0)),
        compiler_params=pltpu.CompilerParams(
            dimension_semantics=("parallel",)),
        cost_estimate=pl.CostEstimate(
            flops=flops, transcendentals=0, bytes_accessed=bytes_accessed),
    )(x, w1, b1, w2, b2, w3p, b3p)

    return out_padded[:B, :out_dim]


def init_params(key):
    """Deterministic init mimicking PyTorch nn.Linear default (U(-1/sqrt(fan_in), +))."""
    def linear(key, fan_in, fan_out):
        kw, kb = jax.random.split(key)
        bound = 1.0 / jnp.sqrt(float(fan_in))
        w = jax.random.uniform(kw, (fan_in, fan_out), jnp.float32, -bound, bound)
        b = jax.random.uniform(kb, (1, fan_out), jnp.float32, -bound, bound)
        return w, b

    k1, k2, k3 = jax.random.split(key, 3)
    w1, b1 = linear(k1, 8, 128)
    w2, b2 = linear(k2, 128, 128)
    w3, b3 = linear(k3, 128, 4)
    return {"w1": w1, "b1": b1, "w2": w2, "b2": b2, "w3": w3, "b3": b3}


def dqn_reference(x, p):
    h1 = jnp.maximum(x @ p["w1"] + p["b1"], 0.0)
    h2 = jnp.maximum(h1 @ p["w2"] + p["b2"], 0.0)
    return h2 @ p["w3"] + p["b3"]


if __name__ == "__main__":
    key = jax.random.PRNGKey(0)
    kx, kp = jax.random.split(key)

    B = 8  # small batch of state vectors (state dim = 8, e.g. LunarLander)
    x = jax.random.normal(kx, (B, 8), jnp.float32)
    params = init_params(kp)

    out = dqn_forward(x, params)
    out = jax.block_until_ready(out)

    ref = dqn_reference(x, params)
    assert out.shape == (B, 4), out.shape
    # bf16 matmul inputs with f32 accumulation -> loosened tolerance vs f32 ref.
    assert jnp.allclose(out, ref, atol=2e-2, rtol=2e-2), "mismatch vs reference"

    print("KERNEL_OK")
</pallas_src>

<mosaic_0001>
module attributes {stable_mosaic.version = 11 : i64} {
  func.func @dqn_kernel(%arg0: i32, %arg1: memref<8x8xf32, #tpu.memory_space<vmem>>, %arg2: memref<8x128xf32, #tpu.memory_space<vmem>>, %arg3: memref<1x128xf32, #tpu.memory_space<vmem>>, %arg4: memref<128x128xbf16, #tpu.memory_space<vmem>>, %arg5: memref<1x128xf32, #tpu.memory_space<vmem>>, %arg6: memref<128x128xbf16, #tpu.memory_space<vmem>>, %arg7: memref<1x128xf32, #tpu.memory_space<vmem>>, %arg8: memref<8x128xf32, #tpu.memory_space<vmem>>) attributes {dimension_semantics = [#tpu.dimension_semantics<parallel>], iteration_bounds = array<i64: 1>, scalar_prefetch = 0 : i64, scratch_operands = 0 : i64, tpu.core_type = #tpu.core_type<tc>, window_params = [{transform_indices = @transform_0, window_bounds = array<i64: 8, 8>}, {pipeline_mode = #tpu.pipeline_mode<synchronous>, transform_indices = @transform_1, window_bounds = array<i64: 8, 128>}, {pipeline_mode = #tpu.pipeline_mode<synchronous>, transform_indices = @transform_2, window_bounds = array<i64: 1, 128>}, {pipeline_mode = #tpu.pipeline_mode<synchronous>, transform_indices = @transform_3, window_bounds = array<i64: 128, 128>}, {pipeline_mode = #tpu.pipeline_mode<synchronous>, transform_indices = @transform_4, window_bounds = array<i64: 1, 128>}, {pipeline_mode = #tpu.pipeline_mode<synchronous>, transform_indices = @transform_5, window_bounds = array<i64: 128, 128>}, {pipeline_mode = #tpu.pipeline_mode<synchronous>, transform_indices = @transform_6, window_bounds = array<i64: 1, 128>}, {transform_indices = @transform_7, window_bounds = array<i64: 8, 128>}]} {
    %c0 = arith.constant 0 : index
    %c0_0 = arith.constant 0 : index
    %0 = vector.load %arg1[%c0, %c0_0] : memref<8x8xf32, #tpu.memory_space<vmem>>, vector<8x8xf32>
    %c0_1 = arith.constant 0 : index
    %c0_2 = arith.constant 0 : index
    %1 = vector.load %arg2[%c0_1, %c0_2] : memref<8x128xf32, #tpu.memory_space<vmem>>, vector<8x128xf32>
    %c0_3 = arith.constant 0 : index
    %c0_4 = arith.constant 0 : index
    %2 = vector.load %arg3[%c0_3, %c0_4] : memref<1x128xf32, #tpu.memory_space<vmem>>, vector<1x128xf32>
    %3 = vector.shape_cast %2 : vector<1x128xf32> to vector<1x128xf32>
    %4 = vector.broadcast %3 : vector<1x128xf32> to vector<8x128xf32>
    %5 = vector.extract_strided_slice %0 {offsets = [0, 0], sizes = [8, 1], strides = [1, 1]} : vector<8x8xf32> to vector<8x1xf32>
    %6 = vector.extract_strided_slice %1 {offsets = [0, 0], sizes = [1, 128], strides = [1, 1]} : vector<8x128xf32> to vector<1x128xf32>
    %7 = vector.broadcast %5 : vector<8x1xf32> to vector<8x128xf32>
    %8 = vector.broadcast %6 : vector<1x128xf32> to vector<8x128xf32>
    %9 = arith.mulf %7, %8 : vector<8x128xf32>
    %10 = arith.addf %4, %9 : vector<8x128xf32>
    %11 = vector.extract_strided_slice %0 {offsets = [0, 1], sizes = [8, 1], strides = [1, 1]} : vector<8x8xf32> to vector<8x1xf32>
    %12 = vector.extract_strided_slice %1 {offsets = [1, 0], sizes = [1, 128], strides = [1, 1]} : vector<8x128xf32> to vector<1x128xf32>
    %13 = vector.broadcast %11 : vector<8x1xf32> to vector<8x128xf32>
    %14 = vector.broadcast %12 : vector<1x128xf32> to vector<8x128xf32>
    %15 = arith.mulf %13, %14 : vector<8x128xf32>
    %16 = arith.addf %10, %15 : vector<8x128xf32>
    %17 = vector.extract_strided_slice %0 {offsets = [0, 2], sizes = [8, 1], strides = [1, 1]} : vector<8x8xf32> to vector<8x1xf32>
    %18 = vector.extract_strided_slice %1 {offsets = [2, 0], sizes = [1, 128], strides = [1, 1]} : vector<8x128xf32> to vector<1x128xf32>
    %19 = vector.broadcast %17 : vector<8x1xf32> to vector<8x128xf32>
    %20 = vector.broadcast %18 : vector<1x128xf32> to vector<8x128xf32>
    %21 = arith.mulf %19, %20 : vector<8x128xf32>
    %22 = arith.addf %16, %21 : vector<8x128xf32>
    %23 = vector.extract_strided_slice %0 {offsets = [0, 3], sizes = [8, 1], strides = [1, 1]} : vector<8x8xf32> to vector<8x1xf32>
    %24 = vector.extract_strided_slice %1 {offsets = [3, 0], sizes = [1, 128], strides = [1, 1]} : vector<8x128xf32> to vector<1x128xf32>
    %25 = vector.broadcast %23 : vector<8x1xf32> to vector<8x128xf32>
    %26 = vector.broadcast %24 : vector<1x128xf32> to vector<8x128xf32>
    %27 = arith.mulf %25, %26 : vector<8x128xf32>
    %28 = arith.addf %22, %27 : vector<8x128xf32>
    %29 = vector.extract_strided_slice %0 {offsets = [0, 4], sizes = [8, 1], strides = [1, 1]} : vector<8x8xf32> to vector<8x1xf32>
    %30 = vector.extract_strided_slice %1 {offsets = [4, 0], sizes = [1, 128], strides = [1, 1]} : vector<8x128xf32> to vector<1x128xf32>
    %31 = vector.broadcast %29 : vector<8x1xf32> to vector<8x128xf32>
    %32 = vector.broadcast %30 : vector<1x128xf32> to vector<8x128xf32>
    %33 = arith.mulf %31, %32 : vector<8x128xf32>
    %34 = arith.addf %28, %33 : vector<8x128xf32>
    %35 = vector.extract_strided_slice %0 {offsets = [0, 5], sizes = [8, 1], strides = [1, 1]} : vector<8x8xf32> to vector<8x1xf32>
    %36 = vector.extract_strided_slice %1 {offsets = [5, 0], sizes = [1, 128], strides = [1, 1]} : vector<8x128xf32> to vector<1x128xf32>
    %37 = vector.broadcast %35 : vector<8x1xf32> to vector<8x128xf32>
    %38 = vector.broadcast %36 : vector<1x128xf32> to vector<8x128xf32>
    %39 = arith.mulf %37, %38 : vector<8x128xf32>
    %40 = arith.addf %34, %39 : vector<8x128xf32>
    %41 = vector.extract_strided_slice %0 {offsets = [0, 6], sizes = [8, 1], strides = [1, 1]} : vector<8x8xf32> to vector<8x1xf32>
    %42 = vector.extract_strided_slice %1 {offsets = [6, 0], sizes = [1, 128], strides = [1, 1]} : vector<8x128xf32> to vector<1x128xf32>
    %43 = vector.broadcast %41 : vector<8x1xf32> to vector<8x128xf32>
    %44 = vector.broadcast %42 : vector<1x128xf32> to vector<8x128xf32>
    %45 = arith.mulf %43, %44 : vector<8x128xf32>
    %46 = arith.addf %40, %45 : vector<8x128xf32>
    %47 = vector.extract_strided_slice %0 {offsets = [0, 7], sizes = [8, 1], strides = [1, 1]} : vector<8x8xf32> to vector<8x1xf32>
    %48 = vector.extract_strided_slice %1 {offsets = [7, 0], sizes = [1, 128], strides = [1, 1]} : vector<8x128xf32> to vector<1x128xf32>
    %49 = vector.broadcast %47 : vector<8x1xf32> to vector<8x128xf32>
    %50 = vector.broadcast %48 : vector<1x128xf32> to vector<8x128xf32>
    %51 = arith.mulf %49, %50 : vector<8x128xf32>
    %52 = arith.addf %46, %51 : vector<8x128xf32>
    %cst = arith.constant 0.000000e+00 : f32
    %53 = vector.broadcast %cst : f32 to vector<8x128xf32>
    %54 = arith.maximumf %52, %53 : vector<8x128xf32>
    %55 = arith.truncf %54 : vector<8x128xf32> to vector<8x128xbf16>
    %c0_5 = arith.constant 0 : index
    %c0_6 = arith.constant 0 : index
    %56 = vector.load %arg4[%c0_5, %c0_6] : memref<128x128xbf16, #tpu.memory_space<vmem>>, vector<128x128xbf16>
    %cst_7 = arith.constant dense<0.000000e+00> : vector<8x128xf32>
    %57 = tpu.matmul %55, %56, %cst_7 {dimension_numbers = #tpu.dot_dimension_numbers<[1], [0], [0], [1], [0, 0, 1, 1], [], []>} : vector<8x128xbf16>, vector<128x128xbf16>, vector<8x128xf32> -> vector<8x128xf32>
    %c0_8 = arith.constant 0 : index
    %c0_9 = arith.constant 0 : index
    %58 = vector.load %arg5[%c0_8, %c0_9] : memref<1x128xf32, #tpu.memory_space<vmem>>, vector<1x128xf32>
    %59 = vector.broadcast %58 : vector<1x128xf32> to vector<8x128xf32>
    %60 = arith.addf %57, %59 : vector<8x128xf32>
    %cst_10 = arith.constant 0.000000e+00 : f32
    %61 = vector.broadcast %cst_10 : f32 to vector<8x128xf32>
    %62 = arith.maximumf %60, %61 : vector<8x128xf32>
    %63 = arith.truncf %62 : vector<8x128xf32> to vector<8x128xbf16>
    %c0_11 = arith.constant 0 : index
    %c0_12 = arith.constant 0 : index
    %64 = vector.load %arg6[%c0_11, %c0_12] : memref<128x128xbf16, #tpu.memory_space<vmem>>, vector<128x128xbf16>
    %cst_13 = arith.constant dense<0.000000e+00> : vector<8x128xf32>
    %65 = tpu.matmul %63, %64, %cst_13 {dimension_numbers = #tpu.dot_dimension_numbers<[1], [0], [0], [1], [0, 0, 1, 1], [], []>} : vector<8x128xbf16>, vector<128x128xbf16>, vector<8x128xf32> -> vector<8x128xf32>
    %c0_14 = arith.constant 0 : index
    %c0_15 = arith.constant 0 : index
    %66 = vector.load %arg7[%c0_14, %c0_15] : memref<1x128xf32, #tpu.memory_space<vmem>>, vector<1x128xf32>
    %67 = vector.broadcast %66 : vector<1x128xf32> to vector<8x128xf32>
    %68 = arith.addf %65, %67 : vector<8x128xf32>
    %c0_16 = arith.constant 0 : index
    %c0_17 = arith.constant 0 : index
    %69 = vector.load %arg8[%c0_16, %c0_17] : memref<8x128xf32, #tpu.memory_space<vmem>>, vector<8x128xf32>
    tpu.vector_store %arg8[%c0_16, %c0_17], %68 {strides = array<i32>} : memref<8x128xf32, #tpu.memory_space<vmem>>, vector<8x128xf32>,
    return
  }
  func.func @transform_0(%arg0: i32) -> (i32, i32) {
    %c0_i32 = arith.constant 0 : i32
    %c0_i32_0 = arith.constant 0 : i32
    return %arg0, %c0_i32 : i32, i32
  }
  func.func @transform_1(%arg0: i32) -> (i32, i32) {
    %c0_i32 = arith.constant 0 : i32
    %c0_i32_0 = arith.constant 0 : i32
    %c0_i32_1 = arith.constant 0 : i32
    return %c0_i32, %c0_i32_0 : i32, i32
  }
  func.func @transform_2(%arg0: i32) -> (i32, i32) {
    %c0_i32 = arith.constant 0 : i32
    %c0_i32_0 = arith.constant 0 : i32
    %c0_i32_1 = arith.constant 0 : i32
    return %c0_i32, %c0_i32_0 : i32, i32
  }
  func.func @transform_3(%arg0: i32) -> (i32, i32) {
    %c0_i32 = arith.constant 0 : i32
    %c0_i32_0 = arith.constant 0 : i32
    %c0_i32_1 = arith.constant 0 : i32
    return %c0_i32, %c0_i32_0 : i32, i32
  }
  func.func @transform_4(%arg0: i32) -> (i32, i32) {
    %c0_i32 = arith.constant 0 : i32
    %c0_i32_0 = arith.constant 0 : i32
    %c0_i32_1 = arith.constant 0 : i32
    return %c0_i32, %c0_i32_0 : i32, i32
  }
  func.func @transform_5(%arg0: i32) -> (i32, i32) {
    %c0_i32 = arith.constant 0 : i32
    %c0_i32_0 = arith.constant 0 : i32
    %c0_i32_1 = arith.constant 0 : i32
    return %c0_i32, %c0_i32_0 : i32, i32
  }
  func.func @transform_6(%arg0: i32) -> (i32, i32) {
    %c0_i32 = arith.constant 0 : i32
    %c0_i32_0 = arith.constant 0 : i32
    %c0_i32_1 = arith.constant 0 : i32
    return %c0_i32, %c0_i32_0 : i32, i32
  }
  func.func @transform_7(%arg0: i32) -> (i32, i32) {
    %c0_i32 = arith.constant 0 : i32
    %c0_i32_0 = arith.constant 0 : i32
    return %arg0, %c0_i32 : i32, i32
  }
}

</mosaic_0001>

<bundles_post_ra>
// kernel: tpu_custom_call.1
= control target key start
LH: loop header
LB: loop body
LE: loop exit
PB: predicated region body
PF: predicated region fallthrough
CT: control target
= control target key end

     0   :  { %12 = vsyncpa [#allocation3], 0  ;;  %s794_s0 = inlined_call_operand.hbm [shape: f32[8,8], index: 0, kind: input, shape index: {}]   ;;  %s795_s1 = inlined_call_operand.hbm [shape: f32[8,128], index: 1, kind: input, shape index: {}]   ;;  %s796_s2 = inlined_call_operand.vmem [shape: f32[1,128], index: 2, kind: input, shape index: {}]   ;;  %s797_s3 = inlined_call_operand.hbm [shape: bf16[128,128], index: 3, kind: input, shape index: {}]   ;;  %s798_s4 = inlined_call_operand.vmem [shape: f32[1,128], index: 4, kind: input, shape index: {}]   ;;  %s799_s5 = inlined_call_operand.hbm [shape: bf16[128,128], index: 5, kind: input, shape index: {}]   ;;  %s800_s6 = inlined_call_operand.vmem [shape: f32[1,128], index: 6, kind: input, shape index: {}]   ;;  %s801_s7 = inlined_call_operand.hbm [shape: f32[8,128], index: 7, kind: output, shape index: {}]  }
   0x1   :  { %13 = vsyncpa [#allocation6], 0 }
   0x2   :  { %14 = vsyncpa [#allocation9], 0 }
   0x3   :  { %15 = vsyncpa [#allocation4], 0  ;;  %s650_s24 = smov [#allocation5]   ;;  %s651_s26 = smov [#allocation2]  }
   0x4   :  { %s32_s25 = sshll.u32 %s650_s24, 4  ;;  %s22_s27 = sshll.u32 %s651_s26, 4  ;;  %s33_s25 = int_to_ptr.vmem [resolvable:$true] %s32_s25  ;;  %s23_s27 = int_to_ptr.vmem [resolvable:$true] %s22_s27 }
   0x5   :  { %s532_s30 = scalar_lea.hbm %s795_s1, 128 }
   0x6   :  { %p533_p0 = scmp.ne.s32.totalorder %s795_s1, %s532_s30  ;;  %p536_p1 = scmp.lt.u32.totalorder %s532_s30, %s795_s1 }
   0x8   :  { %p538_p2 = pnand %p536_p1, %p533_p0 }
   0xa   :  { %541 = shalt.err (!%p538_p2)
}
   0xb   :  { %s542_s12 = scalar_lea.vmem %s33_s25, 128  ;;  %p547_p4 = scmp.lt.s32.totalorder %s33_s25, %s33_s25 }
   0xc   :  { %p543_p3 = scmp.ne.s32.totalorder %s33_s25, %s542_s12  ;;  %p548_p5 = scmp.lt.s32.totalorder %s542_s12, %s542_s12 }
   0xe   :  { %p549_p6 = por %p548_p5, %p547_p4 }
  0x10   :  { %p550_p7 = pnand %p549_p6, %p543_p3 }
  0x12   :  { %553 = shalt.err (!%p550_p7)
}
  0x13   :  { %35 = dma.hbm_to_vmem [thread:$0]  %s795_s1, 128, %s33_s25, [#allocation6]  }
  0x14   :  { %s554_s17 = scalar_lea.hbm %s794_s0, 128 }
  0x15   :  { %p555_p8 = scmp.ne.s32.totalorder %s794_s0, %s554_s17  ;;  %p558_p9 = scmp.lt.u32.totalorder %s554_s17, %s794_s0 }
  0x17   :  { %p560_p10 = pnand %p558_p9, %p555_p8 }
  0x19   :  { %563 = shalt.err (!%p560_p10)
}
  0x1a   :  { %s564_s22 = scalar_lea.vmem %s23_s27, 128  ;;  %p569_p12 = scmp.lt.s32.totalorder %s23_s27, %s23_s27 }
  0x1b   :  { %p565_p11 = scmp.ne.s32.totalorder %s23_s27, %s564_s22  ;;  %p570_p13 = scmp.lt.s32.totalorder %s564_s22, %s564_s22 }
  0x1d   :  { %p571_p0 = por %p570_p13, %p569_p12 }
  0x1f   :  { %p572_p1 = pnand %p571_p0, %p565_p11 }
  0x21   :  { %575 = shalt.err (!%p572_p1)
}
  0x22   :  { %25 = dma.hbm_to_vmem [thread:$0]  %s794_s0, 128, %s23_s27, [#allocation3]  }
  0x23   :  { %s652_s24 = smov [#allocation7]   ;;  %s576_s29 = scalar_lea.hbm %s797_s3, 1024 }
  0x24   :  { %s43_s25 = sshll.u32 %s652_s24, 4  ;;  %p577_p2 = scmp.ne.s32.totalorder %s797_s3, %s576_s29  ;;  %s44_s25 = int_to_ptr.vmem [resolvable:$true] %s43_s25 }
  0x25   :  { %p580_p3 = scmp.lt.u32.totalorder %s576_s29, %s797_s3 }
  0x27   :  { %p582_p4 = pnand %p580_p3, %p577_p2 }
  0x29   :  { %585 = shalt.err (!%p582_p4)
}
  0x2a   :  { %s586_s11 = scalar_lea.vmem %s44_s25, 1024  ;;  %p591_p6 = scmp.lt.s32.totalorder %s44_s25, %s44_s25 }
  0x2b   :  { %p587_p5 = scmp.ne.s32.totalorder %s44_s25, %s586_s11  ;;  %p592_p7 = scmp.lt.s32.totalorder %s586_s11, %s586_s11 }
  0x2d   :  { %p593_p8 = por %p592_p7, %p591_p6 }
  0x2f   :  { %p594_p9 = pnand %p593_p8, %p587_p5 }
  0x31   :  { %597 = shalt.err (!%p594_p9)
}
  0x32   :  { %s653_s0 = smov 64   ;;  %s654_s27 = smov 4  }
  0x33   :  { %49 = dma.hbm_to_vmem [thread:$0]  %s797_s3, 1024, %s44_s25, [#allocation6], %s653_s0, %s653_s0, %s654_s27  }
  0x34   :  { %s655_s14 = smov [#allocation8]   ;;  %s598_s18 = scalar_lea.hbm %s799_s5, 1024 }
  0x35   :  { %s57_s15 = sshll.u32 %s655_s14, 4  ;;  %p599_p10 = scmp.ne.s32.totalorder %s799_s5, %s598_s18  ;;  %s58_s15 = int_to_ptr.vmem [resolvable:$true] %s57_s15 }
  0x36   :  { %p602_p11 = scmp.lt.u32.totalorder %s598_s18, %s799_s5 }
  0x38   :  { %p604_p12 = pnand %p602_p11, %p599_p10 }
  0x3a   :  { %607 = shalt.err (!%p604_p12)
}
  0x3b   :  { %s608_s1 = scalar_lea.vmem %s58_s15, 1024  ;;  %p613_p0 = scmp.lt.s32.totalorder %s58_s15, %s58_s15 }
  0x3c   :  { %p609_p13 = scmp.ne.s32.totalorder %s58_s15, %s608_s1  ;;  %p614_p1 = scmp.lt.s32.totalorder %s608_s1, %s608_s1 }
  0x3e   :  { %p615_p2 = por %p614_p1, %p613_p0 }
  0x40   :  { %p616_p3 = pnand %p615_p2, %p609_p13 }
  0x42   :  { %619 = shalt.err (!%p616_p3)
}
  0x43   :  { %63 = dma.hbm_to_vmem [thread:$0]  %s799_s5, 1024, %s58_s15, [#allocation9], %s653_s0, %s653_s0, %s654_s27  }
  0x44   :  { %642 = dma.done.wait [#allocation3], 128  }
  0x45   :  { %643 = vsyncadd [#allocation3], 4294967168 }
  0x46   :  { %644 = dma.done.wait [#allocation6], 1152  }
  0x47   :  { %645 = vsyncadd [#allocation6], 4294966144 }
  0x48   :  { %646 = dma.done.wait [#allocation9], 1024  }
  0x49   :  { %647 = vsyncadd [#allocation9], 4294966272  ;;  %v656_v0 = vmov 2   ;;  %v657_v1 = vmov 0   ;;  %v658_v2 = vmov 0.0   ;;  %v79_v3 = vld [vmem:[#allocation2] sm:$0xff]  ;;  %v93_v24 = vlaneseq }
  0x4a   :  { %509 = vset.pattern.permute.xlu1 %v656_v0  ;;  %507 = vset.pattern.permute.xlu0 %v657_v1  ;;  %v516_v4 = vld [vmem:[#allocation7] sm:$0xff]   ;;  %v517_v5 = vld [vmem:[#allocation7 + $0x8] sm:$0xff]   ;;  %v659_v6 = vmov 3   ;;  %v660_v7 = vmov 1   ;;  %v518_v8 = vld [vmem:[#allocation7 + $0x10] sm:$0xff]   ;;  %v661_v9 = vmov 4  }
  0x4b   :  { %450 = vmatprep.subr.bf16.mxu0 %v658_v2  ;;  %470 = vmatprep.subr.bf16.mxu1 %v658_v2  ;;  %v662_v10 = vmov 5   ;;  %v519_v11 = vld [vmem:[#allocation7 + $0x18] sm:$0xff]   ;;  %v663_v12 = vmov 6   ;;  %v664_v13 = vmov 7   ;;  %v520_v14 = vld [vmem:[#allocation7 + $0x20] sm:$0xff]   ;;  %v521_v15 = vld [vmem:[#allocation7 + $0x28] sm:$0xff]  }
  0x4c   :  { %110 = vperm.xlu1 %509, %v79_v3   ;;  %90 = vperm.xlu0 %507, %v79_v3   ;;  %v522_v16 = vld [vmem:[#allocation7 + $0x30] sm:$0xff]   ;;  %v523_v17 = vld [vmem:[#allocation7 + $0x38] sm:$0xff]   ;;  %vm665_vm0 = vmmov 0   ;;  %v524_v18 = vld [vmem:[#allocation8] sm:$0xff]   ;;  %v94_v25 = vshrl.u32 %v93_v24, 7  ;;  %s666_s29 = smov [#allocation10]  }
  0x4d   :  { %451 = vmatpush3.bf16.msra.mxu0 %v516_v4  ;;  %466 = vmatprep.mubr.msk.bf16.mxu0 %vm665_vm0, %v658_v2  ;;  %v525_v19 = vld [vmem:[#allocation8 + $0x8] sm:$0xff]   ;;  %v526_v20 = vld [vmem:[#allocation8 + $0x10] sm:$0xff]   ;;  %v527_v21 = vld [vmem:[#allocation8 + $0x18] sm:$0xff]   ;;  %s402_s30 = sshll.u32 %s666_s29, 4  ;;  %s403_s30 = int_to_ptr.vmem [resolvable:$true] %s402_s30 }
  0x4e   :  { %452 = vmatprep.subr.bf16.mxu0 %v658_v2  ;;  %486 = vmatprep.mubr.msk.bf16.mxu1 %vm665_vm0, %v658_v2  ;;  %v528_v22 = vld [vmem:[#allocation8 + $0x20] sm:$0xff]   ;;  %v529_v23 = vld [vmem:[#allocation8 + $0x28] sm:$0xff]   ;;  %v95_v26 = vsub.s32 0, %v94_v25  ;;  %v80_v27 = vld [vmem:[#allocation5] sm:$0xff]  ;;  %v105_v29 = vsub.s32 1, %v94_v25  ;;  %v115_v30 = vsub.s32 2, %v94_v25  ;;  %p625_p5 = scmp.lt.s32.totalorder %s403_s30, %s403_s30 }
  0x4f   :  { %471 = vmatpush3.bf16.msra.mxu1 %v524_v18  ;;  %v413_v33 = vld [vmem:[%s796_s2] ss:$0 sm:$0xff]  ;;  %v125_v35 = vsub.s32 3, %v94_v25  ;;  %v135_v37 = vsub.s32 4, %v94_v25  ;;  %v145_v42 = vsub.s32 5, %v94_v25  ;;  %v155_v49 = vsub.s32 6, %v94_v25 }
  0x50   :  { %510 = vset.pattern.permute.xlu1 %v659_v6  ;;  %508 = vset.pattern.permute.xlu0 %v660_v7  ;;  %v96_v28 = vrot.slane %v80_v27, %v95_v26  ;;  %v106_v36 = vrot.slane %v80_v27, %v105_v29  ;;  %v116_v38 = vrot.slane %v80_v27, %v115_v30  ;;  %v165_v58 = vsub.s32 7, %v94_v25  ;;  %v530_v7 = vld [vmem:[#allocation8 + $0x30] sm:$0xff]  }
  0x51   :  { %120 = vperm.xlu1 %510, %v79_v3   ;;  %100 = vperm.xlu0 %508, %v79_v3   ;;  %v126_v43 = vrot.slane %v80_v27, %v125_v35  ;;  %v136_v45 = vrot.slane %v80_v27, %v135_v37  ;;  %v146_v48 = vrot.slane %v80_v27, %v145_v42 }
  0x52   :  { %453 = vmatpush3.bf16.msra.mxu0 %v517_v5  ;;  %472 = vmatprep.subr.bf16.mxu1 %v658_v2  ;;  %v156_v57 = vrot.slane %v80_v27, %v155_v49  ;;  %v166_v63 = vrot.slane %v80_v27, %v165_v58 }
  0x53   :  { %454 = vmatprep.subr.bf16.mxu0 %v658_v2  ;;  %473 = vmatpush3.bf16.msra.mxu1 %v525_v19 }
  0x54   :  { %474 = vmatprep.subr.bf16.mxu1 %v658_v2 }
  0x55   :  { %511 = vset.pattern.permute.xlu1 %v661_v9  ;;  %512 = vset.pattern.permute.xlu0 %v662_v10  ;;  %v414_v9 = vld [vmem:[%s798_s4] ss:$0 sm:$0xff]  ;;  %s620_s4 = scalar_lea.vmem %s403_s30, 128 }
  0x56   :  { %130 = vperm.xlu1 %511, %v79_v3   ;;  %140 = vperm.xlu0 %512, %v79_v3   ;;  %p621_p4 = scmp.ne.s32.totalorder %s403_s30, %s620_s4  ;;  %p626_p6 = scmp.lt.s32.totalorder %s620_s4, %s620_s4 }
  0x57   :  { %455 = vmatpush3.bf16.msra.mxu0 %v518_v8  ;;  %475 = vmatpush3.bf16.msra.mxu1 %v526_v20  ;;  %v531_v8 = vld [vmem:[#allocation8 + $0x38] sm:$0xff]  }
  0x58   :  { %456 = vmatprep.subr.bf16.mxu0 %v658_v2  ;;  %476 = vmatprep.subr.bf16.mxu1 %v658_v2  ;;  %p627_p7 = por %p626_p6, %p625_p5 }
  0x5a   :  { %513 = vset.pattern.permute.xlu1 %v663_v12  ;;  %515 = vset.pattern.permute.xlu0 %v664_v13  ;;  %p628_p8 = pnand %p627_p7, %p621_p4 }
  0x5b   :  { %150 = vperm.xlu1 %513, %v79_v3   ;;  %457 = vmatpush3.bf16.msra.mxu0 %v519_v11 }
  0x5c   :  { %458 = vmatprep.subr.bf16.mxu0 %v658_v2  ;;  %477 = vmatpush3.bf16.msra.mxu1 %v527_v21 }
  0x5d   :  { %478 = vmatprep.subr.bf16.mxu1 %v658_v2 }
  0x5f   :  { %514 = vset.pattern.permute.xlu1 %v664_v13  ;;  %459 = vmatpush3.bf16.msra.mxu0 %v520_v14 }
  0x60   :  { %160 = vperm.xlu1 %514, %v79_v3   ;;  %460 = vmatprep.subr.bf16.mxu0 %v658_v2 }
  0x61   :  { %479 = vmatpush3.bf16.msra.mxu1 %v528_v22 }
  0x62   :  { %480 = vmatprep.subr.bf16.mxu1 %v658_v2 }
  0x63   :  { %461 = vmatpush3.bf16.msra.mxu0 %v521_v15 }
  0x64   :  { %462 = vmatprep.subr.bf16.mxu0 %v658_v2 }
  0x65   :  { %481 = vmatpush3.bf16.msra.mxu1 %v529_v23 }
  0x66   :  { %482 = vmatprep.subr.bf16.mxu1 %v658_v2 }
  0x67   :  { %463 = vmatpush3.bf16.msra.mxu0 %v522_v16 }
  0x68   :  { %464 = vmatprep.subr.bf16.mxu0 %v658_v2 }
  0x69   :  { %483 = vmatpush3.bf16.msra.mxu1 %v530_v7 }
  0x6a   :  { %484 = vmatprep.subr.bf16.mxu1 %v658_v2 }
  0x6b   :  { %465 = vmatpush3.bf16.msra.mxu0 %v523_v17  ;;  %v423_v17 = vld [vmem:[%s800_s6] ss:$0 sm:$0xff] }
  0x6d   :  { %485 = vmatpush3.bf16.msra.mxu1 %v531_v8 }
  0xcb   :  { %v111_v31 = vpop.permute.xlu1 %110  ;;  %v91_v32 = vpop.permute.xlu0 %90 }
  0xcc   :  { %v97_v34 = vmul.f32 %v96_v28, %v91_v32  ;;  %v117_v46 = vmul.f32 %v116_v38, %v111_v31 }
  0xce   :  { %v98_v39 = vadd.f32 %v413_v33, %v97_v34 }
  0xd0   :  { %v121_v40 = vpop.permute.xlu1 %120  ;;  %v101_v41 = vpop.permute.xlu0 %100 }
  0xd1   :  { %v107_v44 = vmul.f32 %v106_v36, %v101_v41  ;;  %v127_v50 = vmul.f32 %v126_v43, %v121_v40 }
  0xd3   :  { %v108_v47 = vadd.f32 %v107_v44, %v98_v39 }
  0xd5   :  { %v118_v51 = vadd.f32 %v117_v46, %v108_v47  ;;  %v131_v52 = vpop.permute.xlu1 %130  ;;  %v141_v53 = vpop.permute.xlu0 %140 }
  0xd6   :  { %v137_v54 = vmul.f32 %v136_v45, %v131_v52  ;;  %v147_v56 = vmul.f32 %v146_v48, %v141_v53 }
  0xd7   :  { %v128_v55 = vadd.f32 %v127_v50, %v118_v51 }
  0xd9   :  { %v138_v59 = vadd.f32 %v137_v54, %v128_v55 }
  0xda   :  { %v151_v60 = vpop.permute.xlu1 %150 }
  0xdb   :  { %v148_v61 = vadd.f32 %v147_v56, %v138_v59  ;;  %v157_v62 = vmul.f32 %v156_v57, %v151_v60 }
  0xdd   :  { %v158_v1 = vadd.f32 %v157_v62, %v148_v61 }
  0xdf   :  { %v161_v0 = vpop.permute.xlu1 %160 }
  0xe0   :  { %v167_v3 = vmul.f32 %v166_v63, %v161_v0 }
  0xe2   :  { %v168_v4 = vadd.f32 %v167_v3, %v158_v1 }
  0xe4   :  { %v169_v5 = vmax.f32 %v168_v4, 0.0 }
  0xe6   :  { %v170_v6 = vpack.c.bf16 %v169_v5, %v169_v5 }
  0xe8   :  { %467 = vmatmul.mubr.bf16.vlgmr.msra.gmra.mrb[0].mxu0 %v170_v6 }
 0x1bb   :  { %v276_v10 = vpop.f32.mrb[0].mxu0 }
 0x1bc   :  { %v277_v11 = vadd.f32 %v414_v9, %v276_v10  ;;  %v468_v12 = vpop.f32.mrb[1].mxu0 }
 0x1bd   :  { %v279_v13 = vpop.f32.mrb[2].mxu0 }
 0x1be   :  { %v282_v14 = vmax.f32 %v277_v11, 0.0  ;;  %v469_v15 = vpop.f32.mrb[3].mxu0 }
 0x1c0   :  { %v283_v16 = vpack.c.bf16 %v282_v14, %v282_v14 }
 0x1c2   :  { %487 = vmatmul.mubr.bf16.vlgmr.msra.gmra.mrb[0].mxu1 %v283_v16 }
 0x295   :  { %v389_v2 = vpop.f32.mrb[0].mxu1 }
 0x296   :  { %v390_v18 = vadd.f32 %v423_v17, %v389_v2  ;;  %v488_v19 = vpop.f32.mrb[1].mxu1 }
 0x297   :  { %v392_v20 = vpop.f32.mrb[2].mxu1 }
 0x298   :  { %395 = vst [vmem:[#allocation10] sm:$0xff] %v390_v18  ;;  %v489_v21 = vpop.f32.mrb[3].mxu1 }
 0x299   :  { %631 = shalt.err (!%p628_p8)
}
 0x29a   :  { %s632_s6 = scalar_lea.hbm %s801_s7, 128 }
 0x29b   :  { %p633_p9 = scmp.ne.s32.totalorder %s801_s7, %s632_s6  ;;  %p636_p10 = scmp.lt.u32.totalorder %s632_s6, %s801_s7 }
 0x29d   :  { %p638_p11 = pnand %p636_p10, %p633_p9 }
 0x29f   :  { %641 = shalt.err (!%p638_p11)
}
 0x2a0   :  { %405 = dma.vmem_to_hbm [thread:$0]  %s403_s30, 128, %s801_s7, [#allocation4]  }
 0x2a1   :  { %648 = dma.done.wait [#allocation4], 128  }
 0x2a2   :  { %649 = vsyncadd [#allocation4], 4294967168 }
 0x2a3   :  { %409 = vsyncpa [#allocation3], 1 }
 0x2a4   :  { %410 = vsyncpa [#allocation6], 1 }
 0x2a5   :  { %411 = vsyncpa [#allocation9], 1 }
 0x2a6   :  { %412 = vsyncpa [#allocation4], 1 }

</bundles_post_ra>
